<compile_context>
chip_gen: v5e
topology: v5e:2x2
jax: 0.10.0
libtpu: 0.0.40
codegen_flags: <defaults>
</compile_context>

<pallas_src>
import jax
import jax.numpy as jnp
from jax.experimental import pallas as pl
from jax.experimental.pallas import tpu as pltpu


def _cdiv(a, b):
    return -(-a // b)


def _round_up(x, m):
    return ((x + m - 1) // m) * m


def make_fcnn_kernel(n_linear):
    """Kernel refs (in order):
       x_ref          : (TB, input_dim)  input tile (f32), cast to bf16 in-kernel
       w_refs[i]      : (d_in_i, d_out_i) bf16, VMEM-resident (constant index_map)
       b_refs[i]      : (1, d_out_i)      f32,  VMEM-resident (constant index_map)
       y_ref          : (TB, output_dim)  output tile (f32 or bf16)
    """
    def kernel(x_ref, *rest):
        *wb_refs, y_ref = rest
        w_refs = wb_refs[:n_linear]
        b_refs = wb_refs[n_linear:]
        # Cast on the VPU (hidden under the MXU); avoids an extra HBM pass on x.
        h = x_ref[...].astype(jnp.bfloat16)
        for i in range(n_linear):
            # MXU matmul: bf16 operands, f32 accumulation; exact f32 bias add.
            h = jnp.dot(h, w_refs[i][...], preferred_element_type=jnp.float32)
            h = h + b_refs[i][...]
            if i < n_linear - 1:
                # ReLU in f32 on the VPU, then back to bf16 for the next MXU pass.
                h = jnp.maximum(h, 0.0).astype(jnp.bfloat16)
        y_ref[...] = h.astype(y_ref.dtype)

    return kernel


def init_params(key, input_dim, output_dim, n_hidden_layers, hidden_dim):
    """Deterministic synthetic init matching the nn.Linear stack of FCNN."""
    dims = [input_dim] + [hidden_dim] * n_hidden_layers + [output_dim]
    weights, biases = [], []
    for i in range(len(dims) - 1):
        key, kw, kb = jax.random.split(key, 3)
        w = jax.random.normal(kw, (dims[i], dims[i + 1]), jnp.float32) / jnp.sqrt(dims[i])
        b = 0.1 * jax.random.normal(kb, (dims[i + 1],), jnp.float32)
        weights.append(w)
        biases.append(b)
    return weights, biases


def fcnn_pallas(x, weights, biases, *, out_dtype=jnp.float32, max_batch_tile=2048):
    """Pallas forward of FCNN. x: (B, input_dim) f32 -> (B, output_dim) out_dtype."""
    n_linear = len(weights)
    assert n_linear == len(biases) and n_linear >= 1
    B, input_dim = x.shape
    assert weights[0].shape[0] == input_dim, "x last dim must equal first Linear in_dim"
    for i in range(n_linear):
        assert biases[i].shape == (weights[i].shape[1],)
        if i < n_linear - 1:
            assert weights[i].shape[1] == weights[i + 1].shape[0]
    output_dim = weights[-1].shape[1]
    dims = [input_dim] + [w.shape[1] for w in weights]
    max_dim = max(dims)
    # TODO(synk): if output_dim < 128 in a real config, pack/reshape the output in
    # the wrapper so the kernel's out_spec last dim stays lane-dense (>=128).

    # Plain, sublane-aligned operands: bf16 weights, separate f32 (1, d_out) biases.
    w_bf16 = [w.astype(jnp.bfloat16) for w in weights]
    b_f32 = [b.reshape(1, -1).astype(jnp.float32) for b in biases]

    x_itemsize = jnp.dtype(x.dtype).itemsize
    y_itemsize = jnp.dtype(out_dtype).itemsize
    # Sublane granule for the streamed tiles (16 rows if any streamed dtype is 16-bit).
    granule = 16 if (x_itemsize < 4 or y_itemsize < 4) else 8

    # VMEM accounting: resident params (x2 buffers), double-buffered x/y tiles,
    # plus the in-kernel activation footprint (f32 h + bf16 recast per row).
    resident_bytes = 2 * (sum(w.size * 2 for w in w_bf16) + sum(b.size * 4 for b in b_f32))
    per_row_bytes = (2 * input_dim * x_itemsize +
                     2 * output_dim * y_itemsize +
                     max_dim * 6)

    try:
        vmem_phys = pltpu.get_tpu_info().vmem_capacity_bytes
    except Exception:
        vmem_phys = 64 * 1024 * 1024  # conservative (v7x per-TC) fallback
    vmem_budget = min(int(0.6 * vmem_phys), 96 * 1024 * 1024)

    tb_vmem = max(granule, (vmem_budget - resident_bytes) // max(per_row_bytes, 1))
    # Ensure >=2 grid steps so v7x's two TensorCores both get work and the
    # pipeline has something to overlap.
    tb_parallel = _round_up(_cdiv(B, 2), granule)
    TB = max(granule, min(max_batch_tile, tb_vmem, tb_parallel))
    TB = max(granule, (TB // granule) * granule)

    grid = (_cdiv(B, TB),)  # ragged last tile is fine: rows independent, writes clamped

    in_specs = [pl.BlockSpec((TB, input_dim), lambda i: (i, 0))]
    for w in w_bf16:
        in_specs.append(pl.BlockSpec(w.shape, lambda i: (0, 0)))   # VMEM-resident
    for b in b_f32:
        in_specs.append(pl.BlockSpec(b.shape, lambda i: (0, 0)))   # VMEM-resident
    out_spec = pl.BlockSpec((TB, output_dim), lambda i: (i, 0))

    flops = 2 * B * sum(dims[i] * dims[i + 1] for i in range(n_linear))
    bytes_accessed = (x.size * x_itemsize +
                      sum(w.size * 2 for w in w_bf16) +
                      sum(b.size * 4 for b in b_f32) +
                      B * output_dim * y_itemsize)

    vmem_needed = resident_bytes + TB * per_row_bytes + (2 << 20)
    vmem_limit = int(min(max(int(vmem_needed * 1.5), 16 * 1024 * 1024),
                         100 * 1024 * 1024))

    y = pl.pallas_call(
        make_fcnn_kernel(n_linear),
        out_shape=jax.ShapeDtypeStruct((B, output_dim), out_dtype),
        grid=grid,
        in_specs=in_specs,
        out_specs=out_spec,
        compiler_params=pltpu.CompilerParams(
            # Batch tiles are independent -> shard across TCs on v7x megacore.
            dimension_semantics=("parallel",),
            vmem_limit_bytes=vmem_limit,
        ),
        cost_estimate=pl.CostEstimate(
            flops=flops, transcendentals=0, bytes_accessed=bytes_accessed),
    )(x, *w_bf16, *b_f32)
    return y


def fcnn_reference_f32(x, weights, biases):
    """Pure-JAX f32 reference mirroring the PyTorch FCNN forward exactly."""
    h = x
    n = len(weights)
    for i, (w, b) in enumerate(zip(weights, biases)):
        h = jnp.dot(h, w, preferred_element_type=jnp.float32) + b
        if i < n - 1:
            h = jnp.maximum(h, 0.0)
    return h


def fcnn_reference_mixed(x, weights, biases):
    """Same forward with the kernel's numerics: bf16 matmul operands, f32 acc + f32 bias."""
    h = x.astype(jnp.bfloat16)
    n = len(weights)
    for i, (w, b) in enumerate(zip(weights, biases)):
        h = jnp.dot(h, w.astype(jnp.bfloat16), preferred_element_type=jnp.float32)
        h = h + b.astype(jnp.float32)
        if i < n - 1:
            h = jnp.maximum(h, 0.0).astype(jnp.bfloat16)
    return h


if __name__ == "__main__":
    # Small shapes consistent with the module (hidden_dim = module default 128).
    # 128-wide features keep every matmul and the output store lane-dense;
    # batch=32 gives two batch tiles -> both v7x TensorCores get work and the
    # pipeline has something to overlap.
    input_dim = 128
    output_dim = 128
    hidden_dim = 128
    n_hidden_layers = 4
    batch = 32

    key = jax.random.PRNGKey(0)
    key, kx = jax.random.split(key)
    x = jax.random.normal(kx, (batch, input_dim), jnp.float32)

    weights, biases = init_params(key, input_dim, output_dim, n_hidden_layers, hidden_dim)

    y = fcnn_pallas(x, weights, biases)  # default out_dtype=f32 (module semantics)
    y = jax.block_until_ready(y)
    assert y.shape == (batch, output_dim)
    assert y.dtype == jnp.float32

    y_mixed = fcnn_reference_mixed(x, weights, biases)   # same precision recipe
    y_f32 = fcnn_reference_f32(x, weights, biases)       # exact module semantics
    diff_mixed = float(jnp.max(jnp.abs(y - y_mixed)))
    diff_f32 = float(jnp.max(jnp.abs(y - y_f32)))
    assert jnp.allclose(y, y_mixed, rtol=1e-2, atol=1e-2), f"mixed-ref max diff {diff_mixed}"
    assert jnp.allclose(y, y_f32, rtol=1e-1, atol=1e-1), f"f32-ref max diff {diff_f32}"
    print("KERNEL_OK")
</pallas_src>

<mosaic_0001>
module attributes {stable_mosaic.version = 11 : i64} {
  func.func @kernel(%arg0: i32, %arg1: memref<16x128xf32, #tpu.memory_space<vmem>>, %arg2: memref<128x128xbf16, #tpu.memory_space<vmem>>, %arg3: memref<128x128xbf16, #tpu.memory_space<vmem>>, %arg4: memref<128x128xbf16, #tpu.memory_space<vmem>>, %arg5: memref<128x128xbf16, #tpu.memory_space<vmem>>, %arg6: memref<128x128xbf16, #tpu.memory_space<vmem>>, %arg7: memref<1x128xf32, #tpu.memory_space<vmem>>, %arg8: memref<1x128xf32, #tpu.memory_space<vmem>>, %arg9: memref<1x128xf32, #tpu.memory_space<vmem>>, %arg10: memref<1x128xf32, #tpu.memory_space<vmem>>, %arg11: memref<1x128xf32, #tpu.memory_space<vmem>>, %arg12: memref<16x128xf32, #tpu.memory_space<vmem>>) attributes {dimension_semantics = [#tpu.dimension_semantics<parallel>], iteration_bounds = array<i64: 2>, scalar_prefetch = 0 : i64, scratch_operands = 0 : i64, tpu.core_type = #tpu.core_type<tc>, window_params = [{transform_indices = @transform_0, window_bounds = array<i64: 16, 128>}, {pipeline_mode = #tpu.pipeline_mode<synchronous>, transform_indices = @transform_1, window_bounds = array<i64: 128, 128>}, {pipeline_mode = #tpu.pipeline_mode<synchronous>, transform_indices = @transform_2, window_bounds = array<i64: 128, 128>}, {pipeline_mode = #tpu.pipeline_mode<synchronous>, transform_indices = @transform_3, window_bounds = array<i64: 128, 128>}, {pipeline_mode = #tpu.pipeline_mode<synchronous>, transform_indices = @transform_4, window_bounds = array<i64: 128, 128>}, {pipeline_mode = #tpu.pipeline_mode<synchronous>, transform_indices = @transform_5, window_bounds = array<i64: 128, 128>}, {pipeline_mode = #tpu.pipeline_mode<synchronous>, transform_indices = @transform_6, window_bounds = array<i64: 1, 128>}, {pipeline_mode = #tpu.pipeline_mode<synchronous>, transform_indices = @transform_7, window_bounds = array<i64: 1, 128>}, {pipeline_mode = #tpu.pipeline_mode<synchronous>, transform_indices = @transform_8, window_bounds = array<i64: 1, 128>}, {pipeline_mode = #tpu.pipeline_mode<synchronous>, transform_indices = @transform_9, window_bounds = array<i64: 1, 128>}, {pipeline_mode = #tpu.pipeline_mode<synchronous>, transform_indices = @transform_10, window_bounds = array<i64: 1, 128>}, {transform_indices = @transform_11, window_bounds = array<i64: 16, 128>}]} {
    %c0 = arith.constant 0 : index
    %c0_0 = arith.constant 0 : index
    %0 = vector.load %arg1[%c0, %c0_0] : memref<16x128xf32, #tpu.memory_space<vmem>>, vector<16x128xf32>
    %1 = arith.truncf %0 : vector<16x128xf32> to vector<16x128xbf16>
    %c0_1 = arith.constant 0 : index
    %c0_2 = arith.constant 0 : index
    %2 = vector.load %arg2[%c0_1, %c0_2] : memref<128x128xbf16, #tpu.memory_space<vmem>>, vector<128x128xbf16>
    %cst = arith.constant dense<0.000000e+00> : vector<16x128xf32>
    %3 = tpu.matmul %1, %2, %cst {dimension_numbers = #tpu.dot_dimension_numbers<[1], [0], [0], [1], [0, 0, 1, 1], [], []>} : vector<16x128xbf16>, vector<128x128xbf16>, vector<16x128xf32> -> vector<16x128xf32>
    %c0_3 = arith.constant 0 : index
    %c0_4 = arith.constant 0 : index
    %4 = vector.load %arg7[%c0_3, %c0_4] : memref<1x128xf32, #tpu.memory_space<vmem>>, vector<1x128xf32>
    %5 = vector.broadcast %4 : vector<1x128xf32> to vector<16x128xf32>
    %6 = arith.addf %3, %5 : vector<16x128xf32>
    %cst_5 = arith.constant 0.000000e+00 : f32
    %7 = vector.broadcast %cst_5 : f32 to vector<16x128xf32>
    %8 = arith.maximumf %6, %7 : vector<16x128xf32>
    %9 = arith.truncf %8 : vector<16x128xf32> to vector<16x128xbf16>
    %c0_6 = arith.constant 0 : index
    %c0_7 = arith.constant 0 : index
    %10 = vector.load %arg3[%c0_6, %c0_7] : memref<128x128xbf16, #tpu.memory_space<vmem>>, vector<128x128xbf16>
    %cst_8 = arith.constant dense<0.000000e+00> : vector<16x128xf32>
    %11 = tpu.matmul %9, %10, %cst_8 {dimension_numbers = #tpu.dot_dimension_numbers<[1], [0], [0], [1], [0, 0, 1, 1], [], []>} : vector<16x128xbf16>, vector<128x128xbf16>, vector<16x128xf32> -> vector<16x128xf32>
    %c0_9 = arith.constant 0 : index
    %c0_10 = arith.constant 0 : index
    %12 = vector.load %arg8[%c0_9, %c0_10] : memref<1x128xf32, #tpu.memory_space<vmem>>, vector<1x128xf32>
    %13 = vector.broadcast %12 : vector<1x128xf32> to vector<16x128xf32>
    %14 = arith.addf %11, %13 : vector<16x128xf32>
    %cst_11 = arith.constant 0.000000e+00 : f32
    %15 = vector.broadcast %cst_11 : f32 to vector<16x128xf32>
    %16 = arith.maximumf %14, %15 : vector<16x128xf32>
    %17 = arith.truncf %16 : vector<16x128xf32> to vector<16x128xbf16>
    %c0_12 = arith.constant 0 : index
    %c0_13 = arith.constant 0 : index
    %18 = vector.load %arg4[%c0_12, %c0_13] : memref<128x128xbf16, #tpu.memory_space<vmem>>, vector<128x128xbf16>
    %cst_14 = arith.constant dense<0.000000e+00> : vector<16x128xf32>
    %19 = tpu.matmul %17, %18, %cst_14 {dimension_numbers = #tpu.dot_dimension_numbers<[1], [0], [0], [1], [0, 0, 1, 1], [], []>} : vector<16x128xbf16>, vector<128x128xbf16>, vector<16x128xf32> -> vector<16x128xf32>
    %c0_15 = arith.constant 0 : index
    %c0_16 = arith.constant 0 : index
    %20 = vector.load %arg9[%c0_15, %c0_16] : memref<1x128xf32, #tpu.memory_space<vmem>>, vector<1x128xf32>
    %21 = vector.broadcast %20 : vector<1x128xf32> to vector<16x128xf32>
    %22 = arith.addf %19, %21 : vector<16x128xf32>
    %cst_17 = arith.constant 0.000000e+00 : f32
    %23 = vector.broadcast %cst_17 : f32 to vector<16x128xf32>
    %24 = arith.maximumf %22, %23 : vector<16x128xf32>
    %25 = arith.truncf %24 : vector<16x128xf32> to vector<16x128xbf16>
    %c0_18 = arith.constant 0 : index
    %c0_19 = arith.constant 0 : index
    %26 = vector.load %arg5[%c0_18, %c0_19] : memref<128x128xbf16, #tpu.memory_space<vmem>>, vector<128x128xbf16>
    %cst_20 = arith.constant dense<0.000000e+00> : vector<16x128xf32>
    %27 = tpu.matmul %25, %26, %cst_20 {dimension_numbers = #tpu.dot_dimension_numbers<[1], [0], [0], [1], [0, 0, 1, 1], [], []>} : vector<16x128xbf16>, vector<128x128xbf16>, vector<16x128xf32> -> vector<16x128xf32>
    %c0_21 = arith.constant 0 : index
    %c0_22 = arith.constant 0 : index
    %28 = vector.load %arg10[%c0_21, %c0_22] : memref<1x128xf32, #tpu.memory_space<vmem>>, vector<1x128xf32>
    %29 = vector.broadcast %28 : vector<1x128xf32> to vector<16x128xf32>
    %30 = arith.addf %27, %29 : vector<16x128xf32>
    %cst_23 = arith.constant 0.000000e+00 : f32
    %31 = vector.broadcast %cst_23 : f32 to vector<16x128xf32>
    %32 = arith.maximumf %30, %31 : vector<16x128xf32>
    %33 = arith.truncf %32 : vector<16x128xf32> to vector<16x128xbf16>
    %c0_24 = arith.constant 0 : index
    %c0_25 = arith.constant 0 : index
    %34 = vector.load %arg6[%c0_24, %c0_25] : memref<128x128xbf16, #tpu.memory_space<vmem>>, vector<128x128xbf16>
    %cst_26 = arith.constant dense<0.000000e+00> : vector<16x128xf32>
    %35 = tpu.matmul %33, %34, %cst_26 {dimension_numbers = #tpu.dot_dimension_numbers<[1], [0], [0], [1], [0, 0, 1, 1], [], []>} : vector<16x128xbf16>, vector<128x128xbf16>, vector<16x128xf32> -> vector<16x128xf32>
    %c0_27 = arith.constant 0 : index
    %c0_28 = arith.constant 0 : index
    %36 = vector.load %arg11[%c0_27, %c0_28] : memref<1x128xf32, #tpu.memory_space<vmem>>, vector<1x128xf32>
    %37 = vector.broadcast %36 : vector<1x128xf32> to vector<16x128xf32>
    %38 = arith.addf %35, %37 : vector<16x128xf32>
    %c0_29 = arith.constant 0 : index
    %c0_30 = arith.constant 0 : index
    %39 = vector.load %arg12[%c0_29, %c0_30] : memref<16x128xf32, #tpu.memory_space<vmem>>, vector<16x128xf32>
    tpu.vector_store %arg12[%c0_29, %c0_30], %38 {strides = array<i32>} : memref<16x128xf32, #tpu.memory_space<vmem>>, vector<16x128xf32>,
    return
  }
  func.func @transform_0(%arg0: i32) -> (i32, i32) {
    %c0_i32 = arith.constant 0 : i32
    %c0_i32_0 = arith.constant 0 : i32
    return %arg0, %c0_i32 : i32, i32
  }
  func.func @transform_1(%arg0: i32) -> (i32, i32) {
    %c0_i32 = arith.constant 0 : i32
    %c0_i32_0 = arith.constant 0 : i32
    %c0_i32_1 = arith.constant 0 : i32
    return %c0_i32, %c0_i32_0 : i32, i32
  }
  func.func @transform_2(%arg0: i32) -> (i32, i32) {
    %c0_i32 = arith.constant 0 : i32
    %c0_i32_0 = arith.constant 0 : i32
    %c0_i32_1 = arith.constant 0 : i32
    return %c0_i32, %c0_i32_0 : i32, i32
  }
  func.func @transform_3(%arg0: i32) -> (i32, i32) {
    %c0_i32 = arith.constant 0 : i32
    %c0_i32_0 = arith.constant 0 : i32
    %c0_i32_1 = arith.constant 0 : i32
    return %c0_i32, %c0_i32_0 : i32, i32
  }
  func.func @transform_4(%arg0: i32) -> (i32, i32) {
    %c0_i32 = arith.constant 0 : i32
    %c0_i32_0 = arith.constant 0 : i32
    %c0_i32_1 = arith.constant 0 : i32
    return %c0_i32, %c0_i32_0 : i32, i32
  }
  func.func @transform_5(%arg0: i32) -> (i32, i32) {
    %c0_i32 = arith.constant 0 : i32
    %c0_i32_0 = arith.constant 0 : i32
    %c0_i32_1 = arith.constant 0 : i32
    return %c0_i32, %c0_i32_0 : i32, i32
  }
  func.func @transform_6(%arg0: i32) -> (i32, i32) {
    %c0_i32 = arith.constant 0 : i32
    %c0_i32_0 = arith.constant 0 : i32
    %c0_i32_1 = arith.constant 0 : i32
    return %c0_i32, %c0_i32_0 : i32, i32
  }
  func.func @transform_7(%arg0: i32) -> (i32, i32) {
    %c0_i32 = arith.constant 0 : i32
    %c0_i32_0 = arith.constant 0 : i32
    %c0_i32_1 = arith.constant 0 : i32
    return %c0_i32, %c0_i32_0 : i32, i32
  }
  func.func @transform_8(%arg0: i32) -> (i32, i32) {
    %c0_i32 = arith.constant 0 : i32
    %c0_i32_0 = arith.constant 0 : i32
    %c0_i32_1 = arith.constant 0 : i32
    return %c0_i32, %c0_i32_0 : i32, i32
  }
  func.func @transform_9(%arg0: i32) -> (i32, i32) {
    %c0_i32 = arith.constant 0 : i32
    %c0_i32_0 = arith.constant 0 : i32
    %c0_i32_1 = arith.constant 0 : i32
    return %c0_i32, %c0_i32_0 : i32, i32
  }
  func.func @transform_10(%arg0: i32) -> (i32, i32) {
    %c0_i32 = arith.constant 0 : i32
    %c0_i32_0 = arith.constant 0 : i32
    %c0_i32_1 = arith.constant 0 : i32
    return %c0_i32, %c0_i32_0 : i32, i32
  }
  func.func @transform_11(%arg0: i32) -> (i32, i32) {
    %c0_i32 = arith.constant 0 : i32
    %c0_i32_0 = arith.constant 0 : i32
    return %arg0, %c0_i32 : i32, i32
  }
}

</mosaic_0001>

<bundles_post_ra>
// kernel: tpu_custom_call.1
= control target key start
LH: loop header
LB: loop body
LE: loop exit
PB: predicated region body
PF: predicated region fallthrough
CT: control target
= control target key end

     0   :  { %s1920_s0 = inlined_call_operand.hbm [shape: f32[32,128], index: 0, kind: input, shape index: {}]   ;;  %s1921_s1 = inlined_call_operand.hbm [shape: bf16[128,128], index: 1, kind: input, shape index: {}]   ;;  %s1922_s2 = inlined_call_operand.hbm [shape: bf16[128,128], index: 2, kind: input, shape index: {}]   ;;  %s1923_s3 = inlined_call_operand.hbm [shape: bf16[128,128], index: 3, kind: input, shape index: {}]   ;;  %s1924_s4 = inlined_call_operand.hbm [shape: bf16[128,128], index: 4, kind: input, shape index: {}]   ;;  %s1925_s5 = inlined_call_operand.hbm [shape: bf16[128,128], index: 5, kind: input, shape index: {}]   ;;  %s1926_s6 = inlined_call_operand.vmem [shape: f32[1,128], index: 6, kind: input, shape index: {}]   ;;  %s1927_s7 = inlined_call_operand.vmem [shape: f32[1,128], index: 7, kind: input, shape index: {}]   ;;  %s1928_s8 = inlined_call_operand.vmem [shape: f32[1,128], index: 8, kind: input, shape index: {}]   ;;  %s1929_s9 = inlined_call_operand.vmem [shape: f32[1,128], index: 9, kind: input, shape index: {}]   ;;  %s1930_s10 = inlined_call_operand.vmem [shape: f32[1,128], index: 10, kind: input, shape index: {}]   ;;  %s1931_s11 = inlined_call_operand.hbm [shape: f32[32,128], index: 11, kind: output, shape index: {}]  }
   0x1   :  { %1932 = sst [smem:[#allocation20_spill]] %s1921_s1 }
   0x2   :  { %1933 = sst [smem:[#allocation21_spill]] %s1922_s2 }
   0x3   :  { %1934 = sst [smem:[#allocation22_spill]] %s1923_s3 }
   0x4   :  { %1935 = sst [smem:[#allocation23_spill]] %s1924_s4 }
   0x5   :  { %1936 = sst [smem:[#allocation24_spill]] %s1925_s5 }
   0x6   :  { %16 = vsyncpa [#allocation3], 0 }
   0x7   :  { %18 = vsyncpa [#allocation3 + $0x1], 0 }
   0x8   :  { %19 = vsyncpa [#allocation6], 0 }
   0x9   :  { %20 = vsyncpa [#allocation9], 0 }
   0xa   :  { %21 = vsyncpa [#allocation12], 0 }
   0xb   :  { %22 = vsyncpa [#allocation4], 0 }
   0xc   :  { %24 = vsyncpa [#allocation4 + $0x1], 0  ;;  %s1721_s17 = smov 0   ;;  %s1723_s18 = smov 0  }
   0xd   :  { %s1725_s19 = smov 0   ;;  %s1727_s20 = smov 0  }
   0xe LB: > { %s1937_s1 = sld [smem:[#allocation20_spill]]  ;;  %s1745_s24 = sadd.s32 4294967295, %s1648_s20   ;;  %s1648_s20 = sphi %s1727_s20, %s1955_s20   ;;  %s1644_s19 = sphi %s1725_s19, %s1954_s19   ;;  %s1640_s18 = sphi %s1723_s18, %s1953_s18   ;;  %s1636_s17 = sphi %s1721_s17, %s1952_s17  }
   0xf   : > { %p1057_p0 = scmp.ge.s32.totalorder %s1648_s20, 1  ;;  %p51_p1 = scmp.eq.s32.totalorder %s1745_s24, 0 }
  0x10   : > { %p297_p2 = scmp.lt.s32.totalorder %s1648_s20, 3  ;;  %s1650_s26 = smov [#allocation5]  }
  0x11   : > { %s310_s27 = sshll.u32 %s1650_s26, 4  ;;  %s1939_s3 = sld [smem:[#allocation22_spill]]  ;;  %s311_s27 = int_to_ptr.vmem [resolvable:$true] %s310_s27 }
  0x12   : > { %p1750_p3 = pnand %p1057_p0, %p297_p2  ;;  %s1941_s2 = sld [smem:[#allocation21_spill]] }
  0x13   : > { %s1651_s16 = smov [#allocation8]   ;;  %s1652_s22 = smov 64  }
  0x14   : > { %s308_s23 = sshll.u32 %s1937_s1, 4  ;;  %p1306_p4 = pneg %p1750_p3  ;;  %s309_s23 = int_to_ptr.hbm [resolvable:$true] %s308_s23 }
  0x15   : > { %s338_s21 = sshll.u32 %s1651_s16, 4  ;;  %s1653_s26 = smov 4   ;;  %s339_s21 = int_to_ptr.vmem [resolvable:$true] %s338_s21 }
  0x16   : > { %p1762_p6 = pnand %p1306_p4, %p51_p1  ;;  %s1942_s4 = sld [smem:[#allocation23_spill]] }
  0x17   : > { %s336_s30 = sshll.u32 %s1939_s3, 4  ;;  %s1654_s3 = smov [#allocation7]   ;;  %s337_s30 = int_to_ptr.hbm [resolvable:$true] %s336_s30 }
  0x18   : > { %s322_s15 = sshll.u32 %s1941_s2, 4  ;;  %s324_s13 = sshll.u32 %s1654_s3, 4  ;;  %s323_s15 = int_to_ptr.hbm [resolvable:$true] %s322_s15  ;;  %s325_s13 = int_to_ptr.vmem [resolvable:$true] %s324_s13 }
  0x19   : > { %1309 = dma.hbm_to_vmem [thread:$0]  (!%p1762_p6), %s309_s23, 1024, %s311_s27, [#allocation6], %s1652_s22, %s1652_s22, %s1653_s26  }
  0x1a   : > { %1315 = dma.hbm_to_vmem [thread:$0]  (!%p1762_p6), %s337_s30, 1024, %s339_s21, [#allocation9], %s1652_s22, %s1652_s22, %s1653_s26  }
  0x1b   : > { %1312 = dma.hbm_to_vmem [thread:$0]  (!%p1762_p6), %s323_s15, 1024, %s325_s13, [#allocation6], %s1652_s22, %s1652_s22, %s1653_s26  }
  0x1c   : > { %s350_s1 = sshll.u32 %s1942_s4, 4  ;;  %s1655_s23 = smov [#allocation10]   ;;  %s351_s1 = int_to_ptr.hbm [resolvable:$true] %s350_s1 }
  0x1d   : > { %s352_s27 = sshll.u32 %s1655_s23, 4  ;;  %s1943_s5 = sld [smem:[#allocation24_spill]]  ;;  %s353_s27 = int_to_ptr.vmem [resolvable:$true] %s352_s27 }
  0x1e   : > { %1318 = dma.hbm_to_vmem [thread:$0]  (!%p1762_p6), %s351_s1, 1024, %s353_s27, [#allocation9], %s1652_s22, %s1652_s22, %s1653_s26  }
  0x1f   : > { %s1656_s3 = smov [#allocation11]   ;;  %s1056_s15 = sadd.s32 4294967294, %s1648_s20  }
  0x20   : > { %s366_s21 = sshll.u32 %s1656_s3, 4  ;;  %s1787_s28 = sadd.s32 1, %s1648_s20   ;;  %s367_s21 = int_to_ptr.vmem [resolvable:$true] %s366_s21 }
  0x21   : > { %s37_s29 = sadd.s32 1, %s1644_s19  ;;  %s34_s13 = ssub.s32 %s1648_s20, %s1787_s28 }
  0x22   : > { %p44_p7 = scmp.ne.s32.totalorder %s1644_s19, %s1640_s18  ;;  %p35_p8 = scmp.eq.s32.totalorder %s34_s13, 0 }
  0x23   : > { %s364_s16 = sshll.u32 %s1943_s5, 4  ;;  %p45_p9 = scmp.eq.s32.totalorder %s1648_s20, 0  ;;  %s365_s16 = int_to_ptr.hbm [resolvable:$true] %s364_s16 }
  0x24   : > { %1321 = dma.hbm_to_vmem [thread:$0]  (!%p1762_p6), %s365_s16, 1024, %s367_s21, [#allocation12], %s1652_s22, %s1652_s22, %s1653_s26  }
  0x25   : > { %p50_p10 = scmp.ne.s32.totalorder %s1640_s18, %s1636_s17  ;;  %p284_p11 = scmp.eq.s32.totalorder %s1745_s24, 1 }
  0x26   : > { %s1799_s1 = scalar_select %p35_p8, %s1644_s19, %s37_s29  }
  0x27   : > { %p1801_p12 = por %p45_p9, %p44_p7  ;;  %p1807_p13 = por %p51_p1, %p50_p10 }
  0x28   : > { %1944 = sst [smem:[#allocation19_spill]] %s1799_s1  ;;  %p1811_p0 = por %p284_p11, %p44_p7 }
  0x29   : > { %p290_p2 = scmp.eq.s32.totalorder %s1056_s15, 1  ;;  %p1335_p4 = scmp.lt.s32.totalorder %s1648_s20, 2 }
  0x2a   : > { %s395_s26 = sand.u32 1, %s1644_s19   ;;  %s1240_s14 = sshll.u32 %s1648_s20, 4 }
  0x2b   : > { %p1817_p6 = por %p290_p2, %p50_p10  ;;  %s1064_s30 = sshll.u32 %s395_s26, 4 }
  0x2c   : > { %s404_s21 = scalar_lea.hbm %s1920_s0, %s1240_s14  ;;  %s399_s13 = scalar_lea.vmem [#allocation2], %s1064_s30 }
  0x2d   : > { %s405_s29 = sshll.u32 %s404_s21, 4  ;;  %s407_s2 = sshll.u32 %s399_s13, 4  ;;  %s406_s29 = int_to_ptr.hbm [resolvable:$true] %s405_s29  ;;  %s408_s2 = int_to_ptr.vmem [resolvable:$true] %s407_s2 }
  0x2e   : > { %p1827_p7 = pnand %p1335_p4, %p1801_p12  ;;  %s396_s4 = scalar_lea.sflag [#allocation3], %s395_s26 }
  0x2f   : > { %s1540_s5 = sshra.s32 %s406_s29, 4  ;;  %s1547_s16 = scalar_lea.hbm %s1920_s0, 32  ;;  %s1541_s5 = int_to_ptr.hbm [resolvable:$true] %s1540_s5 }
  0x30   : > { %s1542_s1 = scalar_lea.hbm %s1541_s5, 16  ;;  %p1544_p9 = pneg %p1827_p7 }
  0x31   : > { %p1543_p8 = scmp.ne.s32.totalorder %s1541_s5, %s1542_s1  ;;  %p1548_p12 = scmp.lt.s32.totalorder %s1541_s5, %s1920_s0 }
  0x32   : > { %p1549_p2 = scmp.lt.s32.totalorder %s1547_s16, %s1542_s1 }
  0x33   : > { %p1545_p10 = pnand %p1544_p9, %p1543_p8 }
  0x34   : > { %p1550_p4 = por %p1549_p2, %p1548_p12 }
  0x35   : > { %p1546_p11 = pneg %p1545_p10 }
  0x37   : > { %p1551_p5 = pnand %p1550_p4, %p1546_p11 }
  0x39   : > { %1554 = shalt.err (!%p1551_p5)
}
  0x3a   : > { %s1657_s26 = smov 128   ;;  %s1658_s21 = smov 8  }
  0x3b   : > { %1325 = dma.hbm_to_vmem [thread:$0]  (!%p1827_p7), %s406_s29, 256, %s408_s2, %s396_s4, %s1657_s26, %s1657_s26, %s1658_s21  }
  0x3c   : > { %419 = sbr.rel (%p1750_p3) target bundleno = 816 (0x330), region = 64  ;;  %s1844_s13 = sand.u32 (!%p1750_p3), 1, %s1640_s18  }
  0x3d   : > { %s1068_s5 = sshll.u32 (!%p1750_p3), %s1844_s13, 4  ;;  %s422_s1 = scalar_lea.sflag (!%p1750_p3), [#allocation3], %s1844_s13 }
  0x3e   : > { %s1850_s14 = scalar_lea.vmem (!%p1750_p3), [#allocation2], %s1068_s5 }
  0x41   : > { %1615 = dma.done.wait (%p1807_p13), %s422_s1, 256  }
  0x42   : > { %1617 = vsyncadd (%p1807_p13), %s422_s1, 4294967040 }
  0x43   : > { %1619 = dma.done.wait (%p51_p1), [#allocation6], 2048  }
  0x44   : > { %1621 = vsyncadd (%p51_p1), [#allocation6], 4294965248 }
  0x45   : > { %1623 = dma.done.wait (%p51_p1), [#allocation9], 2048  }
  0x46   : > { %1625 = vsyncadd (%p51_p1), [#allocation9], 4294965248 }
  0x47   : > { %1627 = dma.done.wait (%p51_p1), [#allocation12], 1024  }
  0x48   : > { %1629 = vsyncadd (%p51_p1), [#allocation12], 4294966272  ;;  %v1248_v0 = vld [vmem:[#allocation5 + $0x38] sm:$0xff]  ;;  %v1247_v1 = vld [vmem:[#allocation5 + $0x30] sm:$0xff]  ;;  %s1281_s26 = sshll.u32 %s1745_s24, 4  ;;  %s489_s2 = scalar_lea.vmem [#allocation13], %s1068_s5 }
  0x49   : > { %563 = vmatpush.bf16.msra.mxu0 %v1248_v0  ;;  %v1256_v2 = vld [vmem:[#allocation7 + $0x38] sm:$0xff]  ;;  %v1255_v3 = vld [vmem:[#allocation7 + $0x30] sm:$0xff]  ;;  %v1246_v4 = vld [vmem:[#allocation5 + $0x28] sm:$0xff]  ;;  %s932_s4 = sshll.u32 %s489_s2, 4  ;;  %s920_s12 = scalar_lea.sflag [#allocation4], %s1844_s13  ;;  %s933_s4 = int_to_ptr.vmem [resolvable:$true] %s932_s4 }
  0x4a   : > { %648 = vmatpush.bf16.msra.mxu1 %v1256_v2  ;;  %v1254_v5 = vld [vmem:[#allocation7 + $0x28] sm:$0xff]  ;;  %v1245_v6 = vld [vmem:[#allocation5 + $0x20] sm:$0xff]  ;;  %v1244_v8 = vld [vmem:[#allocation5 + $0x18] sm:$0xff]  ;;  %s1590_s5 = scalar_lea.hbm %s1931_s11, 32 }
  0x4b   : > { %v1253_v7 = vld [vmem:[#allocation7 + $0x20] sm:$0xff]  ;;  %v1243_v9 = vld [vmem:[#allocation5 + $0x10] sm:$0xff]  ;;  %v1242_v10 = vld [vmem:[#allocation5 + $0x8] sm:$0xff] }
  0x4c   : > { %v1241_v11 = vld [vmem:[#allocation5] sm:$0xff]  ;;  %v493_v13 = vld [vmem:[%s1850_s14 + $0x8] sm:$0xff]  ;;  %v1251_v16 = vld [vmem:[#allocation7 + $0x10] sm:$0xff] }
  0x4d   : > { %564 = vmatpush.bf16.msra.mxu0 %v1247_v1  ;;  %v492_v12 = vld [vmem:[%s1850_s14] sm:$0xff]  ;;  %v1252_v15 = vld [vmem:[#allocation7 + $0x18] sm:$0xff]  ;;  %v1250_v17 = vld [vmem:[#allocation7 + $0x8] sm:$0xff]  ;;  %s931_s14 = scalar_lea.hbm %s1931_s11, %s1281_s26 }
  0x4e   : > { %649 = vmatpush.bf16.msra.mxu1 %v1255_v3  ;;  %v494_v14 = vpack.c.bf16 %v493_v13, %v492_v12  ;;  %v1249_v18 = vld [vmem:[#allocation7] sm:$0xff]  ;;  %v1264_v19 = vld [vmem:[#allocation8 + $0x38] sm:$0xff]  ;;  %v1263_v20 = vld [vmem:[#allocation8 + $0x30] sm:$0xff]  ;;  %s934_s25 = sshll.u32 %s931_s14, 4  ;;  %s935_s25 = int_to_ptr.hbm [resolvable:$true] %s934_s25 }
  0x4f   : > { %733 = vmatpush.bf16.msra.mxu2 %v1264_v19  ;;  %v1262_v21 = vld [vmem:[#allocation8 + $0x28] sm:$0xff]  ;;  %v1261_v22 = vld [vmem:[#allocation8 + $0x20] sm:$0xff]  ;;  %v1260_v31 = vld [vmem:[#allocation8 + $0x18] sm:$0xff]  ;;  %s1584_s29 = sshra.s32 %s935_s25, 4  ;;  %s1585_s29 = int_to_ptr.hbm [resolvable:$true] %s1584_s29 }
  0x50   : > { %v1385_v24 = vld [vmem:[%s1926_s6] ss:$0 sm:$0xff]  ;;  %v1259_v32 = vld [vmem:[#allocation8 + $0x10] sm:$0xff]  ;;  %v1258_v33 = vld [vmem:[#allocation8 + $0x8] sm:$0xff]  ;;  %s1586_s24 = scalar_lea.hbm %s1585_s29, 16  ;;  %p1591_p13 = scmp.lt.s32.totalorder %s1585_s29, %s1931_s11 }
  0x51   : > { %565 = vmatpush.bf16.msra.mxu0 %v1246_v4  ;;  %v1257_v34 = vld [vmem:[#allocation8] sm:$0xff]  ;;  %v1272_v35 = vld [vmem:[#allocation10 + $0x38] sm:$0xff]  ;;  %v1271_v36 = vld [vmem:[#allocation10 + $0x30] sm:$0xff]  ;;  %p1587_p1 = scmp.ne.s32.totalorder %s1585_s29, %s1586_s24  ;;  %p1592_p7 = scmp.lt.s32.totalorder %s1590_s5, %s1586_s24 }
  0x52   : > { %650 = vmatpush.bf16.msra.mxu1 %v1254_v5  ;;  %818 = vmatpush.bf16.msra.mxu3 %v1272_v35  ;;  %v1270_v37 = vld [vmem:[#allocation10 + $0x28] sm:$0xff]  ;;  %v1269_v38 = vld [vmem:[#allocation10 + $0x20] sm:$0xff]  ;;  %v1268_v47 = vld [vmem:[#allocation10 + $0x18] sm:$0xff] }
  0x53   : > { %734 = vmatpush.bf16.msra.mxu2 %v1263_v20  ;;  %v1386_v40 = vld [vmem:[%s1927_s7] ss:$0 sm:$0xff]  ;;  %v1267_v48 = vld [vmem:[#allocation10 + $0x10] sm:$0xff]  ;;  %v1266_v49 = vld [vmem:[#allocation10 + $0x8] sm:$0xff]  ;;  %p1588_p3 = pnand %p1587_p1, %p1811_p0  ;;  %p1593_p8 = por %p1592_p7, %p1591_p13 }
  0x54   : > { %v1265_v50 = vld [vmem:[#allocation10] sm:$0xff]  ;;  %v1280_v51 = vld [vmem:[#allocation11 + $0x38] sm:$0xff]  ;;  %v1279_v52 = vld [vmem:[#allocation11 + $0x30] sm:$0xff] }
  0x55   : > { %566 = vmatpush.bf16.msra.mxu0 %v1245_v6  ;;  %v1278_v53 = vld [vmem:[#allocation11 + $0x28] sm:$0xff]  ;;  %v1277_v54 = vld [vmem:[#allocation11 + $0x20] sm:$0xff]  ;;  %v1276_v63 = vld [vmem:[#allocation11 + $0x18] sm:$0xff]  ;;  %p1589_p5 = pneg %p1588_p3 }
  0x56   : > { %651 = vmatpush.bf16.msra.mxu1 %v1253_v7  ;;  %819 = vmatpush.bf16.msra.mxu3 %v1271_v36  ;;  %v1387_v56 = vld [vmem:[%s1928_s8] ss:$0 sm:$0xff]  ;;  %v1275_v0 = vld [vmem:[#allocation11 + $0x10] sm:$0xff]  ;;  %v1274_v1 = vld [vmem:[#allocation11 + $0x8] sm:$0xff] }
  0x57   : > { %735 = vmatpush.bf16.msra.mxu2 %v1262_v21  ;;  %v1273_v2 = vld [vmem:[#allocation11] sm:$0xff]  ;;  %p1594_p9 = pnand %p1593_p8, %p1589_p5 }
  0x58   : > { %v1388_v4 = vld [vmem:[%s1929_s9] ss:$0 sm:$0xff] }
  0x59   : > { %567 = vmatpush.bf16.msra.mxu0 %v1244_v8 }
  0x5a   : > { %652 = vmatpush.bf16.msra.mxu1 %v1252_v15  ;;  %820 = vmatpush.bf16.msra.mxu3 %v1270_v37 }
  0x5b   : > { %736 = vmatpush.bf16.msra.mxu2 %v1261_v22 }
  0x5d   : > { %568 = vmatpush.bf16.msra.mxu0 %v1243_v9 }
  0x5e   : > { %653 = vmatpush.bf16.msra.mxu1 %v1251_v16  ;;  %821 = vmatpush.bf16.msra.mxu3 %v1269_v38 }
  0x5f   : > { %737 = vmatpush.bf16.msra.mxu2 %v1260_v31 }
  0x61   : > { %569 = vmatpush.bf16.msra.mxu0 %v1242_v10 }
  0x62   : > { %654 = vmatpush.bf16.msra.mxu1 %v1250_v17  ;;  %822 = vmatpush.bf16.msra.mxu3 %v1268_v47 }
  0x63   : > { %738 = vmatpush.bf16.msra.mxu2 %v1259_v32 }
  0x65   : > { %570 = vmatpush.bf16.msra.mxu0 %v1241_v11  ;;  %v1389_v11 = vld [vmem:[%s1930_s10] ss:$0 sm:$0xff] }
  0x66   : > { %655 = vmatpush.bf16.msra.mxu1 %v1249_v18  ;;  %823 = vmatpush.bf16.msra.mxu3 %v1267_v48 }
  0x67   : > { %739 = vmatpush.bf16.msra.mxu2 %v1258_v33 }
  0x68   : > { %571 = vmatmul.bf16.vlgmr.msra.gmra.mxu0 %v494_v14 }
  0x69   : > { %903 = vmatpush.bf16.msrb.mxu0 %v1280_v51 }
  0x6a   : > { %824 = vmatpush.bf16.msra.mxu3 %v1266_v49 }
  0x6b   : > { %740 = vmatpush.bf16.msra.mxu2 %v1257_v34 }
  0x6d   : > { %904 = vmatpush.bf16.msrb.mxu0 %v1279_v52 }
  0x6e   : > { %825 = vmatpush.bf16.msra.mxu3 %v1265_v50 }
  0x71   : > { %905 = vmatpush.bf16.msrb.mxu0 %v1278_v53 }
  0x75   : > { %906 = vmatpush.bf16.msrb.mxu0 %v1277_v54 }
  0x79   : > { %907 = vmatpush.bf16.msrb.mxu0 %v1276_v63 }
  0x7d   : > { %908 = vmatpush.bf16.msrb.mxu0 %v1275_v0 }
  0x81   : > { %909 = vmatpush.bf16.msrb.mxu0 %v1274_v1 }
  0x85   : > { %910 = vmatpush.bf16.msrb.mxu0 %v1273_v2 }
  0xe5   : > { %v572_v23 = vpop.f32.mrf.mxu0 }
  0xe6   : > { %v573_v25 = vadd.f32 %v1385_v24, %v572_v23 }
  0xe8   : > { %v577_v28 = vmax.f32 %v573_v25, 0.0 }
  0xed   : > { %v574_v26 = vpop.f32.mrf.mxu0 }
  0xee   : > { %v575_v27 = vadd.f32 %v1385_v24, %v574_v26 }
  0xf0   : > { %v578_v29 = vmax.f32 %v575_v27, 0.0 }
  0xf2   : > { %v579_v30 = vpack.c.bf16 %v578_v29, %v577_v28 }
  0xf4   : > { %656 = vmatmul.bf16.vlgmr.msra.gmra.mxu1 %v579_v30 }
 0x171   : > { %v657_v39 = vpop.f32.mrf.mxu1 }
 0x172   : > { %v658_v41 = vadd.f32 %v1386_v40, %v657_v39 }
 0x174   : > { %v662_v44 = vmax.f32 %v658_v41, 0.0 }
 0x179   : > { %v659_v42 = vpop.f32.mrf.mxu1 }
 0x17a   : > { %v660_v43 = vadd.f32 %v1386_v40, %v659_v42 }
 0x17c   : > { %v663_v45 = vmax.f32 %v660_v43, 0.0 }
 0x17e   : > { %v664_v46 = vpack.c.bf16 %v663_v45, %v662_v44 }
 0x180   : > { %741 = vmatmul.bf16.vlgmr.msra.gmra.mxu2 %v664_v46 }
 0x203   : > { %v742_v55 = vpop.f32.mrf.mxu2 }
 0x204   : > { %v743_v57 = vadd.f32 %v1387_v56, %v742_v55 }
 0x206   : > { %v747_v60 = vmax.f32 %v743_v57, 0.0 }
 0x20b   : > { %v744_v58 = vpop.f32.mrf.mxu2 }
 0x20c   : > { %v745_v59 = vadd.f32 %v1387_v56, %v744_v58 }
 0x20e   : > { %v748_v61 = vmax.f32 %v745_v59, 0.0 }
 0x210   : > { %v749_v62 = vpack.c.bf16 %v748_v61, %v747_v60 }
 0x212   : > { %826 = vmatmul.bf16.vlgmr.msra.gmra.mxu3 %v749_v62 }
 0x295   : > { %v827_v3 = vpop.f32.mrf.mxu3 }
 0x296   : > { %v828_v5 = vadd.f32 %v1388_v4, %v827_v3 }
 0x298   : > { %v832_v8 = vmax.f32 %v828_v5, 0.0 }
 0x29d   : > { %v829_v6 = vpop.f32.mrf.mxu3 }
 0x29e   : > { %v830_v7 = vadd.f32 %v1388_v4, %v829_v6 }
 0x2a0   : > { %v833_v9 = vmax.f32 %v830_v7, 0.0 }
 0x2a2   : > { %v834_v10 = vpack.c.bf16 %v833_v9, %v832_v8 }
 0x2a4   : > { %911 = vmatmul.bf16.vlgmr.msrb.gmra.mxu0 %v834_v10 }
 0x321   : > { %v912_v12 = vpop.f32.mrf.mxu0 }
 0x322   : > { %v913_v13 = vadd.f32 %v1389_v11, %v912_v12 }
 0x324   : > { %917 = vst [vmem:[%s489_s2] sm:$0xff] %v913_v13 }
 0x329   : > { %v914_v14 = vpop.f32.mrf.mxu0 }
 0x32a   : > { %v915_v15 = vadd.f32 %v1389_v11, %v914_v14 }
 0x32c   : > { %918 = vst [vmem:[%s489_s2 + $0x8] sm:$0xff] %v915_v15 }
 0x32d   : > { %1597 = shalt.err (!%p1594_p9)
}
 0x32e   : > { %s1659_s13 = smov 128   ;;  %s1660_s23 = smov 8  }
 0x32f   : > { %1304 = dma.vmem_to_hbm [thread:$0]  (%p1811_p0), %s933_s4, 256, %s935_s25, %s920_s12, %s1659_s13, %s1659_s13, %s1660_s23  }
 0x330 PF: > { %s949_s26 = sand.u32 1, %s1636_s17   ;;  %p1950_p10 = scmp.ge.s32.totalorder %s1648_s20, 2 }
 0x331   : > { %s950_s21 = scalar_lea.sflag [#allocation4], %s949_s26 }
 0x332   : > { %p1327_p11 = pnand %p1950_p10, %p1817_p6 }
 0x334   : > { %p1328_p12 = pneg %p1327_p11 }
 0x336   : > { %1631 = dma.done.wait (%p1328_p12), %s950_s21, 256  }
 0x337   : > { %1633 = vsyncadd (%p1328_p12), %s950_s21, 4294967040  ;;  %s1951_s1 = sld [smem:[#allocation19_spill]]  ;;  %p27_p2 = scmp.ge.s32.totalorder %s1787_s28, 4  }
 0x338   : > { %s1952_s17 = smov %s1640_s18  ;;  %s1953_s18 = smov %s1644_s19 }
 0x339   : > { %s1955_s20 = smov %s1787_s28  ;;  %29 = sbr.rel (!%p27_p2) target bundleno = 14 (0xe), region = 129 }
 0x33d   : > { %s1954_s19 = smov %s1951_s1 }
 0x33e   :  { %956 = vsyncpa [#allocation3], 1 }
 0x33f   :  { %958 = vsyncpa [#allocation3 + $0x1], 1 }
 0x340   :  { %959 = vsyncpa [#allocation6], 1 }
 0x341   :  { %960 = vsyncpa [#allocation9], 1 }
 0x342   :  { %961 = vsyncpa [#allocation12], 1 }
 0x343   :  { %962 = vsyncpa [#allocation4], 1 }
 0x344   :  { %964 = vsyncpa [#allocation4 + $0x1], 1 }

</bundles_post_ra>
